<compile_context>
chip_gen: v7x
topology: tpu7x:2x2x1
jax: 0.10.0
libtpu: 0.0.40
codegen_flags: <defaults>
</compile_context>

<pallas_src>
import jax
import jax.numpy as jnp
from jax.experimental import pallas as pl
from jax.experimental.pallas import tpu as pltpu

NEG_INF = -1e30


def decoder_kernel(o1_ref, o2_ref, o3_ref,
                   w1a_ref, w1b_ref, w2a_ref, w2b_ref,
                   mask_ref, logp1_ref, logp2_ref):
    # o*_ref   : (1, H, L)  activations in native NCL layout (H on sublanes, L on lanes)
    # w*_ref   : (H, 1)     split Conv1d(k=1, out_ch=1, bias=False) weight halves
    # mask_ref : (1, 1, L)  float {0,1} mask
    # outputs  : (1, 1, L)  log-probabilities
    x1 = o1_ref[0].astype(jnp.float32)        # (H, L)
    x2 = o2_ref[0].astype(jnp.float32)
    x3 = o3_ref[0].astype(jnp.float32)
    w1a = w1a_ref[...].astype(jnp.float32)    # (H, 1), broadcasts over L
    w1b = w1b_ref[...].astype(jnp.float32)
    w2a = w2a_ref[...].astype(jnp.float32)
    w2b = w2b_ref[...].astype(jnp.float32)
    mask = mask_ref[0]                        # (1, L)

    # kernel_size=1 conv with one output channel == channel-weighted sum.
    # Reduce over H (sublane axis, goes to the otherwise-idle XLU slot).
    logits1 = jnp.sum(x1 * w1a + x2 * w1b, axis=0, keepdims=True)   # (1, L)
    logits2 = jnp.sum(x1 * w2a + x3 * w2b, axis=0, keepdims=True)   # (1, L)

    def masked_log_softmax(logits):
        masked = jnp.where(mask != 0.0, logits, NEG_INF)
        m = jnp.max(masked, axis=-1, keepdims=True)
        shifted = masked - m
        lse = jnp.log(jnp.sum(jnp.exp(shifted), axis=-1, keepdims=True))
        return shifted - lse

    logp1_ref[0] = masked_log_softmax(logits1)
    logp2_ref[0] = masked_log_softmax(logits2)


def decoder_forward(output_1, output_2, output_3, mask, w1, w2):
    """output_k: (B, H, L) float (PyTorch NCL), mask: (B, L), w1/w2: (2H,) conv weights."""
    B, H, L = output_1.shape

    # Pre-split the concatenated conv weights in the wrapper (free layout plumbing).
    w1a = w1[:H].reshape(H, 1).astype(jnp.float32)
    w1b = w1[H:].reshape(H, 1).astype(jnp.float32)
    w2a = w2[:H].reshape(H, 1).astype(jnp.float32)
    w2b = w2[H:].reshape(H, 1).astype(jnp.float32)
    mask3 = mask.astype(jnp.float32).reshape(B, 1, L)

    # One batch element per grid step: activation blocks are (1, H, L) with the last
    # two dims equal to the full array dims (no (8,128) issue), and the batch axis is
    # "parallel" for megacore sharding + pipelined double-buffered DMA.
    spec_act = pl.BlockSpec((1, H, L), lambda b: (b, 0, 0))
    spec_w = pl.BlockSpec((H, 1), lambda b: (0, 0))
    spec_row = pl.BlockSpec((1, 1, L), lambda b: (b, 0, 0))

    out_shape = (jax.ShapeDtypeStruct((B, 1, L), jnp.float32),
                 jax.ShapeDtypeStruct((B, 1, L), jnp.float32))

    itemsize = jnp.dtype(output_1.dtype).itemsize
    bytes_accessed = (3 * B * H * L * itemsize   # activations
                      + B * L * 4                # mask
                      + 4 * H * 4                # weights
                      + 2 * B * L * 4)           # outputs
    cost = pl.CostEstimate(flops=B * L * (4 * H + 12),
                           transcendentals=2 * B * L,
                           bytes_accessed=bytes_accessed)

    logp1, logp2 = pl.pallas_call(
        decoder_kernel,
        grid=(B,),
        in_specs=[spec_act, spec_act, spec_act,
                  spec_w, spec_w, spec_w, spec_w, spec_row],
        out_specs=(spec_row, spec_row),
        out_shape=out_shape,
        compiler_params=pltpu.CompilerParams(
            dimension_semantics=("parallel",)),
        cost_estimate=cost,
    )(output_1, output_2, output_3, w1a, w1b, w2a, w2b, mask3)

    return logp1.reshape(B, L), logp2.reshape(B, L)


def decoder_reference(output_1, output_2, output_3, mask, w1, w2):
    """Pure-JAX reference matching the PyTorch forward exactly."""
    cat1 = jnp.concatenate([output_1, output_2], axis=1)  # (B, 2H, L)
    cat2 = jnp.concatenate([output_1, output_3], axis=1)
    logits1 = jnp.einsum('bcl,c->bl', cat1, w1)
    logits2 = jnp.einsum('bcl,c->bl', cat2, w2)
    maskf = mask.astype(jnp.float32)

    def masked_log_softmax(logits):
        masked = maskf * logits + (1.0 - maskf) * NEG_INF
        return jax.nn.log_softmax(masked, axis=-1)

    return masked_log_softmax(logits1), masked_log_softmax(logits2)


if __name__ == "__main__":
    B, H, L = 2, 32, 16  # batch, hidden_size, sequence length

    key = jax.random.PRNGKey(0)
    k1, k2, k3, kw1, kw2 = jax.random.split(key, 5)

    output_1 = jax.random.normal(k1, (B, H, L), dtype=jnp.float32)
    output_2 = jax.random.normal(k2, (B, H, L), dtype=jnp.float32)
    output_3 = jax.random.normal(k3, (B, H, L), dtype=jnp.float32)

    # Deterministic "Conv1d(2H -> 1, k=1, bias=False)" weights (flattened to (2H,)).
    bound = 1.0 / jnp.sqrt(2.0 * H)
    w1 = jax.random.uniform(kw1, (2 * H,), minval=-bound, maxval=bound,
                            dtype=jnp.float32)
    w2 = jax.random.uniform(kw2, (2 * H,), minval=-bound, maxval=bound,
                            dtype=jnp.float32)

    # Padding mask: first example fully valid, second valid for 10 positions.
    lengths = jnp.array([L, 10], dtype=jnp.int32)
    mask = (jnp.arange(L)[None, :] < lengths[:, None]).astype(jnp.float32)

    log_p1, log_p2 = decoder_forward(output_1, output_2, output_3, mask, w1, w2)
    jax.block_until_ready((log_p1, log_p2))

    ref_p1, ref_p2 = decoder_reference(output_1, output_2, output_3, mask, w1, w2)
    assert jnp.allclose(log_p1, ref_p1, rtol=1e-4, atol=1e-4)
    assert jnp.allclose(log_p2, ref_p2, rtol=1e-4, atol=1e-4)

    print("KERNEL_OK")
</pallas_src>

<mosaic_0001>
module attributes {stable_mosaic.version = 11 : i64} {
  func.func @decoder_kernel(%arg0: i32, %arg1: memref<1x32x16xf32, #tpu.memory_space<vmem>>, %arg2: memref<1x32x16xf32, #tpu.memory_space<vmem>>, %arg3: memref<1x32x16xf32, #tpu.memory_space<vmem>>, %arg4: memref<32x1xf32, #tpu.memory_space<vmem>>, %arg5: memref<32x1xf32, #tpu.memory_space<vmem>>, %arg6: memref<32x1xf32, #tpu.memory_space<vmem>>, %arg7: memref<32x1xf32, #tpu.memory_space<vmem>>, %arg8: memref<1x1x16xf32, #tpu.memory_space<vmem>>, %arg9: memref<1x1x16xf32, #tpu.memory_space<vmem>>, %arg10: memref<1x1x16xf32, #tpu.memory_space<vmem>>) attributes {dimension_semantics = [#tpu.dimension_semantics<parallel>], iteration_bounds = array<i64: 2>, scalar_prefetch = 0 : i64, scratch_operands = 0 : i64, tpu.core_type = #tpu.core_type<tc>, window_params = [{transform_indices = @transform_0, window_bounds = array<i64: 1, 32, 16>}, {transform_indices = @transform_1, window_bounds = array<i64: 1, 32, 16>}, {transform_indices = @transform_2, window_bounds = array<i64: 1, 32, 16>}, {pipeline_mode = #tpu.pipeline_mode<synchronous>, transform_indices = @transform_3, window_bounds = array<i64: 32, 1>}, {pipeline_mode = #tpu.pipeline_mode<synchronous>, transform_indices = @transform_4, window_bounds = array<i64: 32, 1>}, {pipeline_mode = #tpu.pipeline_mode<synchronous>, transform_indices = @transform_5, window_bounds = array<i64: 32, 1>}, {pipeline_mode = #tpu.pipeline_mode<synchronous>, transform_indices = @transform_6, window_bounds = array<i64: 32, 1>}, {transform_indices = @transform_7, window_bounds = array<i64: 1, 1, 16>}, {transform_indices = @transform_8, window_bounds = array<i64: 1, 1, 16>}, {transform_indices = @transform_9, window_bounds = array<i64: 1, 1, 16>}]} {
    %c0 = arith.constant 0 : index
    %c0_0 = arith.constant 0 : index
    %c0_1 = arith.constant 0 : index
    %0 = vector.load %arg1[%c0, %c0_0, %c0_1] : memref<1x32x16xf32, #tpu.memory_space<vmem>>, vector<1x32x16xf32>
    %1 = vector.shape_cast %0 : vector<1x32x16xf32> to vector<32x16xf32>
    %c0_2 = arith.constant 0 : index
    %c0_3 = arith.constant 0 : index
    %c0_4 = arith.constant 0 : index
    %2 = vector.load %arg2[%c0_2, %c0_3, %c0_4] : memref<1x32x16xf32, #tpu.memory_space<vmem>>, vector<1x32x16xf32>
    %3 = vector.shape_cast %2 : vector<1x32x16xf32> to vector<32x16xf32>
    %c0_5 = arith.constant 0 : index
    %c0_6 = arith.constant 0 : index
    %c0_7 = arith.constant 0 : index
    %4 = vector.load %arg3[%c0_5, %c0_6, %c0_7] : memref<1x32x16xf32, #tpu.memory_space<vmem>>, vector<1x32x16xf32>
    %5 = vector.shape_cast %4 : vector<1x32x16xf32> to vector<32x16xf32>
    %c0_8 = arith.constant 0 : index
    %c0_9 = arith.constant 0 : index
    %6 = vector.load %arg4[%c0_8, %c0_9] : memref<32x1xf32, #tpu.memory_space<vmem>>, vector<32x1xf32>
    %c0_10 = arith.constant 0 : index
    %c0_11 = arith.constant 0 : index
    %7 = vector.load %arg5[%c0_10, %c0_11] : memref<32x1xf32, #tpu.memory_space<vmem>>, vector<32x1xf32>
    %c0_12 = arith.constant 0 : index
    %c0_13 = arith.constant 0 : index
    %8 = vector.load %arg6[%c0_12, %c0_13] : memref<32x1xf32, #tpu.memory_space<vmem>>, vector<32x1xf32>
    %c0_14 = arith.constant 0 : index
    %c0_15 = arith.constant 0 : index
    %9 = vector.load %arg7[%c0_14, %c0_15] : memref<32x1xf32, #tpu.memory_space<vmem>>, vector<32x1xf32>
    %c0_16 = arith.constant 0 : index
    %c0_17 = arith.constant 0 : index
    %c0_18 = arith.constant 0 : index
    %10 = vector.load %arg8[%c0_16, %c0_17, %c0_18] : memref<1x1x16xf32, #tpu.memory_space<vmem>>, vector<1x1x16xf32>
    %11 = vector.shape_cast %10 : vector<1x1x16xf32> to vector<1x16xf32>
    %12 = vector.broadcast %6 : vector<32x1xf32> to vector<32x16xf32>
    %13 = arith.mulf %1, %12 : vector<32x16xf32>
    %14 = vector.broadcast %7 : vector<32x1xf32> to vector<32x16xf32>
    %15 = arith.mulf %3, %14 : vector<32x16xf32>
    %16 = arith.addf %13, %15 : vector<32x16xf32>
    %cst = arith.constant dense<0.000000e+00> : vector<16xf32>
    %17 = vector.multi_reduction <add>, %16, %cst [0] : vector<32x16xf32> to vector<16xf32>
    %18 = vector.shape_cast %17 : vector<16xf32> to vector<1x16xf32>
    %19 = vector.broadcast %8 : vector<32x1xf32> to vector<32x16xf32>
    %20 = arith.mulf %1, %19 : vector<32x16xf32>
    %21 = vector.broadcast %9 : vector<32x1xf32> to vector<32x16xf32>
    %22 = arith.mulf %5, %21 : vector<32x16xf32>
    %23 = arith.addf %20, %22 : vector<32x16xf32>
    %cst_19 = arith.constant dense<0.000000e+00> : vector<16xf32>
    %24 = vector.multi_reduction <add>, %23, %cst_19 [0] : vector<32x16xf32> to vector<16xf32>
    %25 = vector.shape_cast %24 : vector<16xf32> to vector<1x16xf32>
    %cst_20 = arith.constant 0.000000e+00 : f32
    %26 = vector.broadcast %cst_20 : f32 to vector<1x16xf32>
    %27 = arith.cmpf one, %11, %26 : vector<1x16xf32>
    %cst_21 = arith.constant -1.000000e+30 : f32
    %28 = vector.broadcast %cst_21 : f32 to vector<1x16xf32>
    %29 = arith.select %27, %18, %28 : vector<1x16xi1>, vector<1x16xf32>
    %cst_22 = arith.constant dense<0xFF800000> : vector<1xf32>
    %30 = vector.multi_reduction <maximumf>, %29, %cst_22 [1] : vector<1x16xf32> to vector<1xf32>
    %31 = vector.shape_cast %30 : vector<1xf32> to vector<1x1xf32>
    %32 = vector.broadcast %31 : vector<1x1xf32> to vector<1x16xf32>
    %33 = arith.subf %29, %32 : vector<1x16xf32>
    %34 = math.exp %33 : vector<1x16xf32>
    %cst_23 = arith.constant dense<0.000000e+00> : vector<1xf32>
    %35 = vector.multi_reduction <add>, %34, %cst_23 [1] : vector<1x16xf32> to vector<1xf32>
    %36 = vector.shape_cast %35 : vector<1xf32> to vector<1x1xf32>
    %37 = math.log %36 : vector<1x1xf32>
    %38 = vector.broadcast %37 : vector<1x1xf32> to vector<1x16xf32>
    %39 = arith.subf %33, %38 : vector<1x16xf32>
    %c0_24 = arith.constant 0 : index
    %c0_25 = arith.constant 0 : index
    %c0_26 = arith.constant 0 : index
    %40 = vector.load %arg9[%c0_24, %c0_25, %c0_26] : memref<1x1x16xf32, #tpu.memory_space<vmem>>, vector<1x1x16xf32>
    %41 = vector.shape_cast %40 : vector<1x1x16xf32> to vector<1x16xf32>
    %42 = vector.shape_cast %39 : vector<1x16xf32> to vector<1x1x16xf32>
    tpu.vector_store %arg9[%c0_24, %c0_25, %c0_26], %42 {strides = array<i32>} : memref<1x1x16xf32, #tpu.memory_space<vmem>>, vector<1x1x16xf32>,
    %cst_27 = arith.constant 0.000000e+00 : f32
    %43 = vector.broadcast %cst_27 : f32 to vector<1x16xf32>
    %44 = arith.cmpf one, %11, %43 : vector<1x16xf32>
    %cst_28 = arith.constant -1.000000e+30 : f32
    %45 = vector.broadcast %cst_28 : f32 to vector<1x16xf32>
    %46 = arith.select %44, %25, %45 : vector<1x16xi1>, vector<1x16xf32>
    %cst_29 = arith.constant dense<0xFF800000> : vector<1xf32>
    %47 = vector.multi_reduction <maximumf>, %46, %cst_29 [1] : vector<1x16xf32> to vector<1xf32>
    %48 = vector.shape_cast %47 : vector<1xf32> to vector<1x1xf32>
    %49 = vector.broadcast %48 : vector<1x1xf32> to vector<1x16xf32>
    %50 = arith.subf %46, %49 : vector<1x16xf32>
    %51 = math.exp %50 : vector<1x16xf32>
    %cst_30 = arith.constant dense<0.000000e+00> : vector<1xf32>
    %52 = vector.multi_reduction <add>, %51, %cst_30 [1] : vector<1x16xf32> to vector<1xf32>
    %53 = vector.shape_cast %52 : vector<1xf32> to vector<1x1xf32>
    %54 = math.log %53 : vector<1x1xf32>
    %55 = vector.broadcast %54 : vector<1x1xf32> to vector<1x16xf32>
    %56 = arith.subf %50, %55 : vector<1x16xf32>
    %c0_31 = arith.constant 0 : index
    %c0_32 = arith.constant 0 : index
    %c0_33 = arith.constant 0 : index
    %57 = vector.load %arg10[%c0_31, %c0_32, %c0_33] : memref<1x1x16xf32, #tpu.memory_space<vmem>>, vector<1x1x16xf32>
    %58 = vector.shape_cast %57 : vector<1x1x16xf32> to vector<1x16xf32>
    %59 = vector.shape_cast %56 : vector<1x16xf32> to vector<1x1x16xf32>
    tpu.vector_store %arg10[%c0_31, %c0_32, %c0_33], %59 {strides = array<i32>} : memref<1x1x16xf32, #tpu.memory_space<vmem>>, vector<1x1x16xf32>,
    return
  }
  func.func @transform_0(%arg0: i32) -> (i32, i32, i32) {
    %c0_i32 = arith.constant 0 : i32
    %c0_i32_0 = arith.constant 0 : i32
    %c0_i32_1 = arith.constant 0 : i32
    return %arg0, %c0_i32, %c0_i32_0 : i32, i32, i32
  }
  func.func @transform_1(%arg0: i32) -> (i32, i32, i32) {
    %c0_i32 = arith.constant 0 : i32
    %c0_i32_0 = arith.constant 0 : i32
    %c0_i32_1 = arith.constant 0 : i32
    return %arg0, %c0_i32, %c0_i32_0 : i32, i32, i32
  }
  func.func @transform_2(%arg0: i32) -> (i32, i32, i32) {
    %c0_i32 = arith.constant 0 : i32
    %c0_i32_0 = arith.constant 0 : i32
    %c0_i32_1 = arith.constant 0 : i32
    return %arg0, %c0_i32, %c0_i32_0 : i32, i32, i32
  }
  func.func @transform_3(%arg0: i32) -> (i32, i32) {
    %c0_i32 = arith.constant 0 : i32
    %c0_i32_0 = arith.constant 0 : i32
    %c0_i32_1 = arith.constant 0 : i32
    return %c0_i32, %c0_i32_0 : i32, i32
  }
  func.func @transform_4(%arg0: i32) -> (i32, i32) {
    %c0_i32 = arith.constant 0 : i32
    %c0_i32_0 = arith.constant 0 : i32
    %c0_i32_1 = arith.constant 0 : i32
    return %c0_i32, %c0_i32_0 : i32, i32
  }
  func.func @transform_5(%arg0: i32) -> (i32, i32) {
    %c0_i32 = arith.constant 0 : i32
    %c0_i32_0 = arith.constant 0 : i32
    %c0_i32_1 = arith.constant 0 : i32
    return %c0_i32, %c0_i32_0 : i32, i32
  }
  func.func @transform_6(%arg0: i32) -> (i32, i32) {
    %c0_i32 = arith.constant 0 : i32
    %c0_i32_0 = arith.constant 0 : i32
    %c0_i32_1 = arith.constant 0 : i32
    return %c0_i32, %c0_i32_0 : i32, i32
  }
  func.func @transform_7(%arg0: i32) -> (i32, i32, i32) {
    %c0_i32 = arith.constant 0 : i32
    %c0_i32_0 = arith.constant 0 : i32
    %c0_i32_1 = arith.constant 0 : i32
    return %arg0, %c0_i32, %c0_i32_0 : i32, i32, i32
  }
  func.func @transform_8(%arg0: i32) -> (i32, i32, i32) {
    %c0_i32 = arith.constant 0 : i32
    %c0_i32_0 = arith.constant 0 : i32
    %c0_i32_1 = arith.constant 0 : i32
    return %arg0, %c0_i32, %c0_i32_0 : i32, i32, i32
  }
  func.func @transform_9(%arg0: i32) -> (i32, i32, i32) {
    %c0_i32 = arith.constant 0 : i32
    %c0_i32_0 = arith.constant 0 : i32
    %c0_i32_1 = arith.constant 0 : i32
    return %arg0, %c0_i32, %c0_i32_0 : i32, i32, i32
  }
}

</mosaic_0001>

<bundles_post_ra>
// kernel: tpu_custom_call.1
= control target key start
LH: loop header
LB: loop body
LE: loop exit
PB: predicated region body
PF: predicated region fallthrough
CT: control target
= control target key end

     0   :  { %s1189_s0 = inlined_call_operand.vmem [shape: f32[2,32,16], index: 0, kind: input, shape index: {}]   ;;  %s1190_s1 = inlined_call_operand.vmem [shape: f32[2,32,16], index: 1, kind: input, shape index: {}]   ;;  %s1191_s2 = inlined_call_operand.vmem [shape: f32[2,32,16], index: 2, kind: input, shape index: {}]   ;;  %s1192_s3 = inlined_call_operand.vmem [shape: f32[32,1], index: 3, kind: input, shape index: {}]   ;;  %s1193_s4 = inlined_call_operand.vmem [shape: f32[32,1], index: 4, kind: input, shape index: {}]   ;;  %s1194_s5 = inlined_call_operand.vmem [shape: f32[32,1], index: 5, kind: input, shape index: {}]   ;;  %s1195_s6 = inlined_call_operand.vmem [shape: f32[32,1], index: 6, kind: input, shape index: {}]   ;;  %s1196_s7 = inlined_call_operand.vmem [shape: f32[2,1,16], index: 7, kind: input, shape index: {}]   ;;  %s1197_s8 = inlined_call_operand.hbm [shape: f32[2,1,16], index: 8, kind: output, shape index: {0}]   ;;  %s1198_s9 = inlined_call_operand.hbm [shape: f32[2,1,16], index: 9, kind: output, shape index: {1}]  }
   0x1   :  { %1201 = sst [smem:[#allocation8_spill]] %s1189_s0 }
   0x2   :  { %15 = vsyncpa [#allocation3], 0 }
   0x3   :  { %17 = vsyncpa [#allocation3 + $0x1], 0 }
   0x4   :  { %18 = vsyncpa [#allocation5], 0 }
   0x5   :  { %20 = vsyncpa [#allocation5 + $0x1], 0  ;;  %s951_s30 = smov 0   ;;  %s953_s10 = smov 0  }
   0x6   :  { %s955_s11 = smov 0   ;;  %s957_s12 = smov 0  }
   0x7 LB: > { %s972_s13 = sadd.s32 4294967295, %s896_s12   ;;  %s730_s14 = sadd.s32 4294967294, %s896_s12   ;;  %s896_s12 = sphi %s957_s12, %s1210_s12   ;;  %s892_s11 = sphi %s955_s11, %s1209_s11   ;;  %s888_s10 = sphi %s953_s10, %s1208_s10   ;;  %s884_s30 = sphi %s951_s30, %s1207_s30  }
   0x8   : > { %s976_s15 = sadd.s32 1, %s896_s12   ;;  %s221_s16 = sadd.s32 1, %s892_s11 }
   0x9   : > { %s218_s17 = ssub.s32 %s896_s12, %s976_s15  ;;  %p231_p0 = scmp.ne.s32.totalorder %s892_s11, %s888_s10 }
   0xa   : > { %p219_p1 = scmp.eq.s32.totalorder %s218_s17, 0  ;;  %p232_p2 = scmp.eq.s32.totalorder %s972_s13, 1 }
   0xb   : > { %p237_p3 = scmp.ne.s32.totalorder %s888_s10, %s884_s30  ;;  %p238_p4 = scmp.eq.s32.totalorder %s730_s14, 1 }
   0xc   : > { %s987_s18 = scalar_select %p219_p1, %s892_s11, %s221_s16  }
   0xd   : > { %p989_p5 = por %p232_p2, %p231_p0  ;;  %p993_p6 = por %p238_p4, %p237_p3 }
   0xe   : > { %p733_p7 = scmp.ge.s32.totalorder %s896_s12, 1  ;;  %p324_p8 = scmp.lt.s32.totalorder %s896_s12, 3 }
  0x10   : > { %p325_p9 = pnand %p733_p7, %p324_p8 }
  0x11   : > { %v410_v0 = vld [vmem:[%s1193_s4] sm:$0xff] (!%p325_p9)  ;;  %v898_v2 = vmov (!%p325_p9), 0   ;;  %v411_v3 = vld [vmem:[%s1193_s4 + $0x8] sm:$0xff] (!%p325_p9)  ;;  %v412_v9 = vld [vmem:[%s1193_s4 + $0x10] sm:$0xff] (!%p325_p9)  ;;  %p376_p10 = scmp.lt.s32.totalorder (!%p325_p9), %s972_s13, 1  ;;  %s1204_s0 = sld [smem:[#allocation8_spill]] (!%p325_p9) }
  0x12   : > { %328 = sbr.rel (%p325_p9) target bundleno = 545 (0x221), region = 52  ;;  %v406_v1 = vld [vmem:[%s1192_s3] sm:$0xff] (!%p325_p9)  ;;  %793 = vset.pattern.permute.xlu1 (!%p325_p9), %v898_v2  ;;  %792 = vset.pattern.permute.xlu0 (!%p325_p9), %v898_v2  ;;  %v407_v4 = vld [vmem:[%s1192_s3 + $0x8] sm:$0xff] (!%p325_p9)  ;;  %v408_v10 = vld [vmem:[%s1192_s3 + $0x10] sm:$0xff] (!%p325_p9)  ;;  %vm475_vm0 = vcmask (!%p325_p9), 130048   ;;  %vm556_vm2 = vcmask (!%p325_p9), 122880  }
  0x13   : > { %449 = vperm.xlu1 (!%p325_p9), %793, %v410_v0   ;;  %425 = vperm.xlu0 (!%p325_p9), %792, %v406_v1   ;;  %v415_v5 = vld [vmem:[%s1194_s5 + $0x8] sm:$0xff] (!%p325_p9)  ;;  %v414_v6 = vld [vmem:[%s1194_s5] sm:$0xff] (!%p325_p9)  ;;  %v420_v11 = vld [vmem:[%s1195_s6 + $0x10] sm:$0xff] (!%p325_p9)  ;;  %s1200_s17 = sshll.u32 (!%p325_p9), %s972_s13, 4 }
  0x14   : > { %v419_v7 = vld [vmem:[%s1195_s6 + $0x8] sm:$0xff] (!%p325_p9)  ;;  %v418_v8 = vld [vmem:[%s1195_s6] sm:$0xff] (!%p325_p9)  ;;  %v416_v12 = vld [vmem:[%s1194_s5 + $0x10] sm:$0xff] (!%p325_p9)  ;;  %s1105_s25 = scalar_lea.hbm (!%p325_p9), %s1197_s8, %s1200_s17 }
  0x15   : > { %v413_v13 = vld [vmem:[%s1193_s4 + $0x18] sm:$0xff] (!%p325_p9) }
  0x16   : > { %v409_v14 = vld [vmem:[%s1192_s3 + $0x18] sm:$0xff] (!%p325_p9) }
  0x17   : > { %454 = vperm.xlu1 (!%p325_p9), %793, %v411_v3   ;;  %430 = vperm.xlu0 (!%p325_p9), %792, %v407_v4   ;;  %v421_v15 = vld [vmem:[%s1195_s6 + $0x18] sm:$0xff] (!%p325_p9) }
  0x18   : > { %v417_v16 = vld [vmem:[%s1194_s5 + $0x18] sm:$0xff] (!%p325_p9) }
  0x19   : > { %s1049_s29 = scalar_select %p376_p10, %s972_s13, 1 }
  0x1b   : > { %496 = vperm.xlu1 %793, %v415_v5   ;;  %491 = vperm.xlu0 %792, %v414_v6   ;;  %s744_s14 = sshll.u32 %s1049_s29, 5  ;;  %s393_s16 = scalar_lea.vmem %s1196_s7, %s1049_s29 }
  0x1c   : > { %s1055_s21 = scalar_lea.vmem %s1190_s1, %s744_s14  ;;  %s1060_s24 = scalar_lea.vmem %s1204_s0, %s744_s14 }
  0x1d   : > { %v399_v23 = vld [vmem:[%s1055_s21 + $0x8] sm:$0xff]  ;;  %v398_v27 = vld [vmem:[%s1055_s21] sm:$0xff]  ;;  %s1069_s27 = scalar_lea.vmem %s1191_s2, %s744_s14  ;;  %v400_v29 = vld [vmem:[%s1055_s21 + $0x10] sm:$0xff]  ;;  %s1096_s29 = sand.u32 1, %s888_s10  }
  0x1e   : > { %v395_v24 = vld [vmem:[%s1060_s24 + $0x8] sm:$0xff]  ;;  %v394_v28 = vld [vmem:[%s1060_s24] sm:$0xff]  ;;  %v396_v30 = vld [vmem:[%s1060_s24 + $0x10] sm:$0xff]  ;;  %s1199_s26 = scalar_lea.vmem [#allocation4], %s1096_s29  ;;  %s585_s28 = scalar_lea.sflag [#allocation3], %s1096_s29 }
  0x1f   : > { %520 = vperm.xlu1 %793, %v419_v7   ;;  %515 = vperm.xlu0 %792, %v418_v8   ;;  %v403_v35 = vld [vmem:[%s1069_s27 + $0x8] sm:$0xff]  ;;  %v402_v36 = vld [vmem:[%s1069_s27] sm:$0xff]  ;;  %v404_v41 = vld [vmem:[%s1069_s27 + $0x10] sm:$0xff] }
  0x20   : > { %v401_v53 = vld [vmem:[%s1055_s21 + $0x18] sm:$0xff]  ;;  %s369_s21 = scalar_lea.vmem [#allocation2], %s1096_s29 }
  0x21   : > { %v397_v54 = vld [vmem:[%s1060_s24 + $0x18] sm:$0xff]  ;;  %s601_s22 = sshll.u32 %s369_s21, 4  ;;  %s1107_s22 = int_to_ptr.vmem [resolvable:$true] %s601_s22 }
  0x22   : > { %v405_v2 = vld [vmem:[%s1069_s27 + $0x18] sm:$0xff]  ;;  %s1112_s27 = sshll.u32 %s1199_s26, 4  ;;  %s802_s14 = scalar_lea.vmem %s1107_s22, 16  ;;  %s1145_s27 = int_to_ptr.vmem [resolvable:$true] %s1112_s27 }
  0x23   : > { %459 = vperm.xlu1 %793, %v412_v9   ;;  %435 = vperm.xlu0 %792, %v408_v10   ;;  %p803_p11 = scmp.ne.s32.totalorder %s1107_s22, %s802_s14 }
  0x25   : > { %p804_p12 = pnand %p803_p11, %p989_p5 }
  0x27   : > { %525 = vperm.xlu1 %793, %v420_v11   ;;  %501 = vperm.xlu0 %792, %v416_v12   ;;  %p805_p13 = pneg %p804_p12 }
  0x2b   : > { %464 = vperm.xlu1 %793, %v413_v13   ;;  %440 = vperm.xlu0 %792, %v409_v14  }
  0x2f   : > { %530 = vperm.xlu1 %793, %v421_v15   ;;  %506 = vperm.xlu0 %792, %v417_v16  }
  0x92   : > { %v450_v17 = vpop.permute.xlu1 %449  ;;  %v426_v18 = vpop.permute.xlu0 %425 }
  0x93   : > { %v467_v33 = vmul.f32 %v450_v17, %v398_v27  ;;  %v443_v34 = vmul.f32 %v426_v18, %v394_v28 }
  0x95   : > { %v471_v45 = vadd.f32 %v467_v33, %v443_v34 }
  0x96   : > { %v455_v19 = vpop.permute.xlu1 %454  ;;  %v431_v20 = vpop.permute.xlu0 %430 }
  0x97   : > { %v468_v31 = vmul.f32 %v455_v19, %v399_v23  ;;  %v444_v32 = vmul.f32 %v431_v20, %v395_v24  ;;  %v476_v58 = vsel %vm475_vm0, %v471_v45, 0.0  ;;  %v422_v23 = vld [vmem:[%s393_s16] sm:$0x1]  ;;  %s899_s16 = smov [#allocation2]  }
  0x98   : > { %vm554_vm1 = vcmp.ne.f32.partialorder %v422_v23, 0.0  ;;  %s806_s23 = sshll.u32 %s899_s16, 4  ;;  %s807_s23 = int_to_ptr.vmem [resolvable:$false] %s806_s23 }
  0x99   : > { %v472_v42 = vadd.f32 %v468_v31, %v444_v32  ;;  %s808_s24 = scalar_lea.vmem %s807_s23, 32  ;;  %p809_p0 = scmp.lt.s32.totalorder %s1107_s22, %s807_s23 }
  0x9a   : > { %v497_v21 = vpop.permute.xlu1 %496  ;;  %v492_v22 = vpop.permute.xlu0 %491  ;;  %p810_p1 = scmp.lt.s32.totalorder %s808_s24, %s802_s14 }
  0x9b   : > { %v510_v46 = vmul.f32 %v497_v21, %v395_v24  ;;  %v509_v49 = vmul.f32 %v492_v22, %v394_v28  ;;  %v477_v55 = vsel %vm475_vm0, %v472_v42, 0.0 }
  0x9c   : > { %v478_v1 = vadd.f32 %v477_v55, %v476_v58  ;;  %p811_p2 = por %p810_p1, %p809_p0 }
  0x9e   : > { %v521_v25 = vpop.permute.xlu1 %520  ;;  %v516_v26 = vpop.permute.xlu0 %515  ;;  %p812_p3 = pnand %p811_p2, %p805_p13 }
  0x9f   : > { %v534_v43 = vmul.f32 %v521_v25, %v403_v35  ;;  %v533_v44 = vmul.f32 %v516_v26, %v402_v36 }
  0xa1   : > { %v538_v56 = vadd.f32 %v534_v43, %v510_v46  ;;  %v537_v57 = vadd.f32 %v533_v44, %v509_v49 }
  0xa2   : > { %v460_v37 = vpop.permute.xlu1 %459  ;;  %v436_v38 = vpop.permute.xlu0 %435 }
  0xa3   : > { %v469_v39 = vmul.f32 %v460_v37, %v400_v29  ;;  %v445_v40 = vmul.f32 %v436_v38, %v396_v30  ;;  %v542_v3 = vsel %vm475_vm0, %v538_v56, 0.0  ;;  %v541_v4 = vsel %vm475_vm0, %v537_v57, 0.0 }
  0xa4   : > { %v543_v13 = vadd.f32 %v542_v3, %v541_v4 }
  0xa5   : > { %v473_v50 = vadd.f32 %v469_v39, %v445_v40 }
  0xa6   : > { %v526_v47 = vpop.permute.xlu1 %525  ;;  %v502_v48 = vpop.permute.xlu0 %501 }
  0xa7   : > { %v535_v51 = vmul.f32 %v526_v47, %v404_v41  ;;  %v511_v52 = vmul.f32 %v502_v48, %v396_v30  ;;  %v479_v61 = vsel %vm475_vm0, %v473_v50, 0.0 }
  0xa8   : > { %v480_v6 = vadd.f32 %v479_v61, %v478_v1 }
  0xa9   : > { %v539_v62 = vadd.f32 %v535_v51, %v511_v52 }
  0xaa   : > { %v465_v59 = vpop.permute.xlu1 %464  ;;  %v441_v60 = vpop.permute.xlu0 %440 }
  0xab   : > { %v470_v63 = vmul.f32 %v465_v59, %v401_v53  ;;  %v446_v0 = vmul.f32 %v441_v60, %v397_v54  ;;  %v544_v9 = vsel %vm475_vm0, %v539_v62, 0.0 }
  0xac   : > { %v545_v16 = vadd.f32 %v544_v9, %v543_v13 }
  0xad   : > { %v474_v5 = vadd.f32 %v470_v63, %v446_v0 }
  0xae   : > { %v531_v7 = vpop.permute.xlu1 %530  ;;  %v507_v8 = vpop.permute.xlu0 %506 }
  0xaf   : > { %v481_v10 = vsel %vm475_vm0, %v474_v5, 0.0  ;;  %v536_v11 = vmul.f32 %v531_v7, %v405_v2  ;;  %v512_v12 = vmul.f32 %v507_v8, %v397_v54 }
  0xb0   : > { %v482_v14 = vadd.f32 %v481_v10, %v480_v6 }
  0xb1   : > { %v540_v15 = vadd.f32 %v536_v11, %v512_v12 }
  0xb2   : > { %v483_v17 = vrot.slane %v482_v14, 4 }
  0xb3   : > { %v546_v18 = vsel %vm475_vm0, %v540_v15, 0.0 }
  0xb4   : > { %v547_v19 = vadd.f32 %v546_v18, %v545_v16  ;;  %v484_v20 = vadd.f32 %v483_v17, %v482_v14 }
  0xb6   : > { %v548_v21 = vrot.slane %v547_v19, 4  ;;  %v485_v22 = vrot.slane %v484_v20, 2 }
  0xb8   : > { %v486_v24 = vadd.f32 %v485_v22, %v484_v20  ;;  %v549_v25 = vadd.f32 %v548_v21, %v547_v19 }
  0xba   : > { %v487_v26 = vrot.slane %v486_v24, 1  ;;  %v550_v27 = vrot.slane %v549_v25, 2 }
  0xbc   : > { %v488_v28 = vadd.f32 %v487_v26, %v486_v24  ;;  %v551_v29 = vadd.f32 %v550_v27, %v549_v25 }
  0xbe   : > { %v555_v30 = vsel %vm554_vm1, %v488_v28, -1e+30  ;;  %v552_v31 = vrot.slane %v551_v29, 1 }
  0xbf   : > { %v557_v32 = vsel %vm556_vm2, %v555_v30, -inf }
  0xc0   : > { %558 = vmax.xlane.f32.xlu0 %v557_v32  ;;  %v553_v33 = vadd.f32 %v552_v31, %v551_v29 }
  0xc2   : > { %v570_v34 = vsel %vm554_vm1, %v553_v33, -1e+30 }
  0xc3   : > { %v571_v35 = vsel %vm556_vm2, %v570_v34, -inf }
  0xc4   : > { %572 = vmax.xlane.f32.xlu1 %v571_v35 }
 0x14d   : > { %v559_v36 = vpop.xlane.xlu0 %558 }
 0x14e   : > { %v560_v37 = vsub.f32 %v555_v30, %v559_v36 }
 0x150   : > { %v561_v38 = vmul.f32 1.442695, %v560_v37 }
 0x151   : > { %v573_v39 = vpop.xlane.xlu1 %572 }
 0x152   : > { %794 = vpow2.f32 %v561_v38  ;;  %v574_v40 = vsub.f32 %v570_v34, %v573_v39 }
 0x154   : > { %v575_v41 = vmul.f32 1.442695, %v574_v40 }
 0x156   : > { %796 = vpow2.f32 %v575_v41 }
 0x15c   : > { %v795_v42 = vpop.eup %794 }
 0x15d   : > { %v563_v43 = vsel %vm556_vm2, %v795_v42, 0.0 }
 0x15e   : > { %564 = vadd.xlane.f32.xlu0 %v563_v43 }
 0x160   : > { %v797_v44 = vpop.eup %796 }
 0x161   : > { %v577_v45 = vsel %vm556_vm2, %v797_v44, 0.0 }
 0x162   : > { %578 = vadd.xlane.f32.xlu0 %v577_v45 }
 0x1eb   : > { %v565_v46 = vpop.xlane.xlu0 %564 }
 0x1ec   : > { %798 = vlog2.f32 %v565_v46 }
 0x1ef   : > { %v579_v47 = vpop.xlane.xlu0 %578 }
 0x1f0   : > { %800 = vlog2.f32 %v579_v47 }
 0x1f6   : > { %v799_v48 = vpop.eup %798 }
 0x1f7   : > { %v567_v49 = vmul.f32 0.6931472, %v799_v48 }
 0x1f9   : > { %v568_v50 = vsub.f32 %v560_v37, %v567_v49 }
 0x1fa   : > { %v801_v51 = vpop.eup %800 }
 0x1fb   : > { %v581_v52 = vmul.f32 0.6931472, %v801_v51  ;;  %569 = vst.msk [vmem:[%s369_s21] sm:$0x1] %vm556_vm2, %v568_v50 }
 0x1fc   : > { %815 = shalt.err (!%p812_p3)
}
 0x1fd   : > { %s816_s21 = scalar_lea.hbm %s1105_s25, 16  ;;  %s820_s16 = scalar_lea.hbm %s1197_s8, 32 }
 0x1fe   : > { %p817_p4 = scmp.ne.s32.totalorder %s1105_s25, %s816_s21  ;;  %p821_p9 = scmp.lt.u32.totalorder %s1105_s25, %s1197_s8 }
 0x1ff   : > { %p822_p10 = scmp.lt.u32.totalorder %s820_s16, %s816_s21  ;;  %p824_p12 = scmp.lt.u32.totalorder %s816_s21, %s1105_s25 }
 0x200   : > { %p818_p7 = pnand %p817_p4, %p989_p5 }
 0x201   : > { %p823_p11 = por %p822_p10, %p821_p9 }
 0x202   : > { %p819_p8 = pneg %p818_p7 }
 0x203   : > { %p825_p13 = por %p824_p12, %p823_p11 }
 0x205   : > { %p826_p0 = pnand %p825_p13, %p819_p8 }
 0x207   : > { %829 = shalt.err (!%p826_p0)
}
 0x208   : > { %747 = dma.vmem_to_hbm [thread:$0]  (%p989_p5), %s1107_s22, 16, %s1105_s25, %s585_s28   ;;  %v582_v53 = vsub.f32 %v574_v40, %v581_v52 }
 0x209   : > { %s1205_s17 = sshll.u32 %s972_s13, 4  ;;  %s1206_s24 = scalar_lea.vmem [#allocation4], %s1096_s29 }
 0x20a   : > { %s1142_s14 = scalar_lea.hbm %s1198_s9, %s1205_s17  ;;  %583 = vst.msk [vmem:[%s1206_s24] sm:$0x1] %vm556_vm2, %v582_v53  ;;  %s589_s21 = scalar_lea.sflag [#allocation5], %s1096_s29 }
 0x20b   : > { %s830_s16 = scalar_lea.vmem %s1145_s27, 16  ;;  %s900_s13 = smov [#allocation4]  }
 0x20c   : > { %p831_p1 = scmp.ne.s32.totalorder %s1145_s27, %s830_s16  ;;  %s834_s22 = sshll.u32 %s900_s13, 4  ;;  %s835_s22 = int_to_ptr.vmem [resolvable:$false] %s834_s22 }
 0x20d   : > { %s836_s25 = scalar_lea.vmem %s835_s22, 32  ;;  %p837_p4 = scmp.lt.s32.totalorder %s1145_s27, %s835_s22 }
 0x20e   : > { %p832_p2 = pnand %p831_p1, %p989_p5  ;;  %p838_p7 = scmp.lt.s32.totalorder %s836_s25, %s830_s16 }
 0x210   : > { %p833_p3 = pneg %p832_p2  ;;  %p839_p8 = por %p838_p7, %p837_p4 }
 0x212   : > { %p840_p9 = pnand %p839_p8, %p833_p3 }
 0x214   : > { %843 = shalt.err (!%p840_p9)
}
 0x215   : > { %s844_s29 = scalar_lea.hbm %s1142_s14, 16  ;;  %s848_s17 = scalar_lea.hbm %s1198_s9, 32 }
 0x216   : > { %p845_p10 = scmp.ne.s32.totalorder %s1142_s14, %s844_s29  ;;  %p849_p13 = scmp.lt.u32.totalorder %s1142_s14, %s1198_s9 }
 0x217   : > { %p850_p0 = scmp.lt.u32.totalorder %s848_s17, %s844_s29  ;;  %p852_p2 = scmp.lt.u32.totalorder %s844_s29, %s1142_s14 }
 0x218   : > { %p846_p11 = pnand %p845_p10, %p989_p5 }
 0x219   : > { %p851_p1 = por %p850_p0, %p849_p13 }
 0x21a   : > { %p847_p12 = pneg %p846_p11 }
 0x21b   : > { %p853_p3 = por %p852_p2, %p851_p1 }
 0x21d   : > { %p854_p4 = pnand %p853_p3, %p847_p12 }
 0x21f   : > { %857 = shalt.err (!%p854_p4)
}
 0x220   : > { %748 = dma.vmem_to_hbm [thread:$0]  (%p989_p5), %s1145_s27, 16, %s1142_s14, %s589_s21  }
 0x221 PF: > { %p758_p7 = scmp.ge.s32.totalorder %s896_s12, 2  ;;  %s626_s24 = sand.u32 1, %s884_s30  }
 0x222   : > { %s627_s16 = scalar_lea.sflag [#allocation3], %s626_s24 }
 0x223   : > { %p752_p8 = pnand %p758_p7, %p993_p6 }
 0x225   : > { %875 = dma.done.wait (!%p752_p8), %s627_s16, 16  }
 0x226   : > { %877 = vsyncadd (!%p752_p8), %s627_s16, 4294967280  ;;  %s635_s13 = scalar_lea.sflag [#allocation5], %s626_s24 }
 0x227   : > { %879 = dma.done.wait (!%p752_p8), %s635_s13, 16  }
 0x228   : > { %881 = vsyncadd (!%p752_p8), %s635_s13, 4294967280  ;;  %p23_p5 = scmp.ge.s32.totalorder %s976_s15, 4   ;;  %s1207_s30 = smov %s888_s10 }
 0x229   : > { %s1208_s10 = smov %s892_s11  ;;  %s1209_s11 = smov %s987_s18 }
 0x22a   : > { %s1210_s12 = smov %s976_s15  ;;  %25 = sbr.rel (!%p23_p5) target bundleno = 7 (0x7), region = 113 }
 0x231   :  { %639 = vsyncpa [#allocation3], 1 }
 0x232   :  { %641 = vsyncpa [#allocation3 + $0x1], 1 }
 0x233   :  { %642 = vsyncpa [#allocation5], 1 }
 0x234   :  { %644 = vsyncpa [#allocation5 + $0x1], 1 }

</bundles_post_ra>
